<compile_context>
chip_gen: v7x
topology: tpu7x:2x2x1
jax: 0.10.0
libtpu: 0.0.40
codegen_flags: <defaults>
</compile_context>

<pallas_src>
import functools

import jax
import jax.numpy as jnp
from jax.experimental import pallas as pl
from jax.experimental.pallas import tpu as pltpu

_ROBUST_L1_EPS = 0.001                     # uflow/smurf robust_l1: sqrt(x^2 + eps^2)
_EPS2 = _ROBUST_L1_EPS * _ROBUST_L1_EPS


# ---------------------------------------------------------------------------
# math helpers shared by the kernel and the (tiny) pure-JAX seam/tail path
# ---------------------------------------------------------------------------
def _edge_weight(g, abs_fun, coef, axis=0):
    """exp(-coef * sum_over_channels af(g)); channel axis = `axis`.

    'exp': |g| channel-sum stays in g's dtype (bf16 packed vregs on v6e/v7x),
    cast to f32 only right before the EUP exp.  'gauss': square in f32.
    """
    if abs_fun == "exp":
        cs = jnp.sum(jnp.abs(g), axis=axis).astype(jnp.float32)
    else:  # 'gauss'
        gf = g.astype(jnp.float32)
        cs = jnp.sum(gf * gf, axis=axis)
    return jnp.exp(-coef * cs)


def _robust_l1_sum(d, axis=0):
    """Sum over the flow-channel axis of sqrt(d^2 + eps^2); d is f32."""
    return jnp.sum(jnp.sqrt(d * d + _EPS2), axis=axis)


def _flow_diff_roll(flow, axis, order, size):
    """First/second difference along `axis` via independent native-dtype rolls.

    The rolls stay in the input dtype (half the XLU vreg traffic for bf16) and
    the linear combination is done in f32.  Positions within `order` of the end
    hold wrap-around garbage (masked out / dropped by the callers).
    """
    f0 = flow.astype(jnp.float32)
    f1 = pltpu.roll(flow, size - 1, axis=axis).astype(jnp.float32)
    if order == 1:
        return f1 - f0
    f2 = pltpu.roll(flow, size - 2, axis=axis).astype(jnp.float32)
    return f2 - 2.0 * f1 + f0


# ---------------------------------------------------------------------------
# kernel
# ---------------------------------------------------------------------------
def _bilateral_smooth_kernel(img_ref, flow_ref, out_ref,
                             carry_img_ref, carry_flow_ref,
                             *, abs_fun, coef, order):
    """One (split p, batch n, row-tile h) grid step.

    img_ref  : (C,  TH, W) image tile        flow_ref : (Cf, TH, W) flow tile
    out_ref  : (2, W) per-(p, n) partial sums, revisited across the h axis
               (row 0: x-term column sums, row 1: y-term column sums)
    carry_*  : last `order` rows of the previous tile of the same (p, n) slice
               (halo for y-gradients across the tile boundary).
    """
    h = pl.program_id(2)
    s = order

    img = img_ref[...]                         # (C, TH, W), native dtype
    flow = flow_ref[...]                       # (Cf, TH, W)
    _, TH, W = img.shape

    @pl.when(h == 0)
    def _init():
        out_ref[...] = jnp.zeros_like(out_ref)

    # ---- boundary y-terms, batched over the `s` halo rows (h > 0 only) ----
    @pl.when(h > 0)
    def _boundary():
        ci = carry_img_ref[...]                # (C,  s, W)
        cf = carry_flow_ref[...]               # (Cf, s, W)
        w_rows = _edge_weight(img[:, :s, :] - ci, abs_fun, coef)        # (s, W)
        if s == 1:
            d = flow[:, :1, :].astype(jnp.float32) - cf.astype(jnp.float32)
        else:
            stack = jnp.concatenate([cf, flow[:, :s, :]], axis=1)       # (Cf, 4, W)
            d = (stack[:, 2:4, :].astype(jnp.float32)
                 - 2.0 * stack[:, 1:3, :].astype(jnp.float32)
                 + stack[:, 0:2, :].astype(jnp.float32))
        r_rows = _robust_l1_sum(d)                                      # (s, W)
        out_ref[1:2, :] += jnp.sum(w_rows * r_rows, axis=0, keepdims=True)

    # ---- x direction: complete inside the tile (lane rolls on the XLU) ----
    w_x = _edge_weight(pltpu.roll(img, W - s, axis=2) - img, abs_fun, coef)
    rx = _robust_l1_sum(_flow_diff_roll(flow, axis=2, order=s, size=W))
    # Columns >= W - s hold wrap-around garbage; they stay in their own columns
    # and the wrapper drops them, so no in-kernel mask is needed.
    sx = jnp.sum(w_x * rx, axis=0, keepdims=True)                       # (1, W)

    # ---- y direction: rows whose +s neighbour lies inside this tile ----
    w_y = _edge_weight(pltpu.roll(img, TH - s, axis=1) - img, abs_fun, coef)
    ry = _robust_l1_sum(_flow_diff_roll(flow, axis=1, order=s, size=TH))
    prod_y = w_y * ry
    # The last `s` rows wrap; subtract their tiny contribution instead of a
    # per-pixel iota/where mask (saves 2-3 VALU ops per pixel).
    sy = (jnp.sum(prod_y, axis=0, keepdims=True)
          - jnp.sum(prod_y[TH - s:, :], axis=0, keepdims=True))         # (1, W)

    # single coalesced (2, W) read-modify-write of the accumulator block
    out_ref[...] += jnp.concatenate([sx, sy], axis=0)

    # ---- carry the last `s` rows for the next tile's boundary terms ----
    carry_img_ref[...] = img[:, TH - s:, :]
    carry_flow_ref[...] = flow[:, TH - s:, :]


# ---------------------------------------------------------------------------
# tiny pure-JAX corrections (split seam, H % 8 tail, tiny-H fallback)
# ---------------------------------------------------------------------------
def _x_sum_jax(img, flow, r0, r1, s, abs_fun, coef):
    """Edge-weighted x-term sum for rows [r0, r1)."""
    if r1 <= r0:
        return jnp.zeros((), jnp.float32)
    im = img[:, :, r0:r1, :]
    fl = flow[:, :, r0:r1, :].astype(jnp.float32)
    w = _edge_weight(im[:, :, :, s:] - im[:, :, :, :-s], abs_fun, coef, axis=1)
    if s == 1:
        d = fl[:, :, :, 1:] - fl[:, :, :, :-1]
    else:
        d = fl[:, :, :, 2:] - 2.0 * fl[:, :, :, 1:-1] + fl[:, :, :, :-2]
    return jnp.sum(w * _robust_l1_sum(d, axis=1))


def _y_sum_jax(img, flow, r0, r1, s, abs_fun, coef):
    """Edge-weighted y-term sum for base rows [r0, r1) (needs rows < r1 + s)."""
    if r1 <= r0:
        return jnp.zeros((), jnp.float32)
    n = r1 - r0
    im = img[:, :, r0:r1 + s, :]
    fl = flow[:, :, r0:r1 + s, :].astype(jnp.float32)
    w = _edge_weight(im[:, :, s:s + n, :] - im[:, :, 0:n, :], abs_fun, coef, axis=1)
    if s == 1:
        d = fl[:, :, 1:n + 1, :] - fl[:, :, 0:n, :]
    else:
        d = fl[:, :, 2:n + 2, :] - 2.0 * fl[:, :, 1:n + 1, :] + fl[:, :, 0:n, :]
    return jnp.sum(w * _robust_l1_sum(d, axis=1))


# ---------------------------------------------------------------------------
# wrapper
# ---------------------------------------------------------------------------
def _vmem_capacity_bytes():
    try:
        return int(pltpu.get_tpu_info().vmem_capacity_bytes)
    except Exception:
        return 64 * 1024 * 1024            # conservative: assume v7x-sized VMEM


def _pick_tile_h(h_slice, max_rows):
    """Largest multiple-of-8 tile dividing the 8-aligned body of h_slice."""
    body = (h_slice // 8) * 8
    cap = max(8, min(body, max_rows))
    best = 8
    for cand in range(8, cap + 1, 8):
        if body % cand == 0:
            best = cand
    return best


def bilateral_smooth(img, flow, *, weight, abs_fun, edge_constant, order,
                     tile_h=None, split_h=None):
    """Pallas version of BilateralSmooth(weight, abs_fun, edge_constant, order)(img, flow)."""
    if weight == 0:
        return jnp.zeros((), jnp.float32)          # BaseLoss.forward() returns 0
    if abs_fun not in ("exp", "gauss"):
        raise ValueError(f"unknown abs_fun {abs_fun!r}")
    order = int(order)
    if order not in (1, 2):
        raise ValueError(f"unsupported order {order}")
    s = order

    N, C, H, W = img.shape
    Nf, Cf, Hf, Wf = flow.shape
    assert (Nf, Hf, Wf) == (N, H, W), "img/flow batch or spatial mismatch"
    assert H > s and W > s

    # fold edge_constant into the channel reduction (exact algebraic rewrite)
    if abs_fun == "exp":
        coef = abs(float(edge_constant)) / C
    else:
        coef = float(edge_constant) ** 2 / C

    count_x = N * Cf * H * (W - s)
    count_y = N * Cf * (H - s) * W

    # ---- generation-aware budgets (v5e/v6e: 128 MiB VMEM, v7x: 64 MiB) ----
    vmem_cap = _vmem_capacity_bytes()
    vmem_limit = min(vmem_cap // 2, 64 * 1024 * 1024)
    budget = max(8 * 1024 * 1024, vmem_cap // 4)   # per-step working-set target
    itemsize = max(jnp.dtype(img.dtype).itemsize, jnp.dtype(flow.dtype).itemsize)
    # 2x double-buffered inputs + ~(2C + 2Cf + 6) f32 (TH, W) intermediates per row
    per_row = (2 * (C + Cf) * itemsize + (2 * C + 2 * Cf + 6) * 4) * W
    max_rows = max(8, (budget // per_row) // 8 * 8)

    if H < 8:
        # Too small for one (8, W)-aligned tile: compute it all in (tiny) pure JAX.
        sum_x = _x_sum_jax(img, flow, 0, H, s, abs_fun, coef)
        sum_y = _y_sum_jax(img, flow, 0, H - s, s, abs_fun, coef)
        loss = (sum_x / count_x + sum_y / count_y) * 0.5 * float(weight)
        return loss.astype(jnp.float32)

    # ---- split the H range in two so v7x megacore has work when N can't feed it ----
    if split_h is None:
        split_h = (N == 1) and (H >= 32)
    n_split = 2 if (split_h and H // 2 >= 8) else 1
    h_slice = H // n_split

    if tile_h is None:
        tile_h = _pick_tile_h(h_slice, max_rows)
    if tile_h % 8 != 0 or tile_h < 8 or tile_h > h_slice:
        raise ValueError(f"tile_h={tile_h} must be a multiple of 8 in [8, {h_slice}]")
    assert tile_h > s

    num_h = h_slice // tile_h                  # row-tiles per split slice
    rows_per_slice = num_h * tile_h
    rows_kernel = n_split * rows_per_slice     # rows covered by the kernel

    kernel = functools.partial(_bilateral_smooth_kernel,
                               abs_fun=abs_fun, coef=coef, order=s)

    partial_sums = pl.pallas_call(
        kernel,
        out_shape=jax.ShapeDtypeStruct((n_split, N, 2, W), jnp.float32),
        grid=(n_split, N, num_h),
        in_specs=[
            pl.BlockSpec((None, C, tile_h, W),
                         lambda p, n, h: (n, 0, p * num_h + h, 0)),
            pl.BlockSpec((None, Cf, tile_h, W),
                         lambda p, n, h: (n, 0, p * num_h + h, 0)),
        ],
        out_specs=pl.BlockSpec((None, None, 2, W), lambda p, n, h: (p, n, 0, 0)),
        scratch_shapes=[
            pltpu.VMEM((C, s, W), img.dtype),     # img halo rows
            pltpu.VMEM((Cf, s, W), flow.dtype),   # flow halo rows
        ],
        compiler_params=pltpu.CompilerParams(
            dimension_semantics=("parallel", "parallel", "arbitrary"),
            vmem_limit_bytes=vmem_limit,
        ),
    )(img, flow)

    # Tiny final reduction + normalization (static counts) in the wrapper; each
    # (split, batch) slice owns its own partial block, so this is megacore-safe.
    sum_x = jnp.sum(partial_sums[:, :, 0, :W - s])    # drop wrap-around columns
    sum_y = jnp.sum(partial_sums[:, :, 1, :])

    # seam between split slices: y-terms whose gradient crosses the slice boundary
    for p in range(1, n_split):
        b = p * rows_per_slice
        sum_y = sum_y + _y_sum_jax(img, flow, b - s, b, s, abs_fun, coef)

    # tail rows not covered by multiple-of-8 tiles (e.g. H % 8 != 0)
    if rows_kernel < H:
        sum_x = sum_x + _x_sum_jax(img, flow, rows_kernel, H, s, abs_fun, coef)
    sum_y = sum_y + _y_sum_jax(img, flow, rows_kernel - s, H - s, s, abs_fun, coef)

    loss = (sum_x / count_x + sum_y / count_y) * 0.5 * float(weight)
    return loss.astype(jnp.float32)


# ----- pure-JAX reference (mirrors the PyTorch module) for verification -----
def _reference(img, flow, *, weight, abs_fun, edge_constant, order):
    img = img.astype(jnp.float32)
    flow = flow.astype(jnp.float32)
    s = order
    img_gx = img[:, :, :, s:] - img[:, :, :, :-s]
    img_gy = img[:, :, s:, :] - img[:, :, :-s, :]
    flow_gx = flow[:, :, :, 1:] - flow[:, :, :, :-1]
    flow_gy = flow[:, :, 1:, :] - flow[:, :, :-1, :]
    af = jnp.abs if abs_fun == "exp" else (lambda v: v * v)
    w_x = jnp.exp(-jnp.mean(af(edge_constant * img_gx), axis=1, keepdims=True))
    w_y = jnp.exp(-jnp.mean(af(edge_constant * img_gy), axis=1, keepdims=True))
    if order == 1:
        tx, ty = flow_gx, flow_gy
    else:
        tx = flow_gx[:, :, :, 1:] - flow_gx[:, :, :, :-1]
        ty = flow_gy[:, :, 1:, :] - flow_gy[:, :, :-1, :]
    rl1 = lambda x: jnp.sqrt(x * x + _EPS2)
    loss = (jnp.mean(w_x * rl1(tx)) + jnp.mean(w_y * rl1(ty))) / 2
    return loss * weight


if __name__ == "__main__":
    key = jax.random.PRNGKey(0)
    k_img, k_flow = jax.random.split(key)

    N, C, H, W = 2, 4, 16, 16
    # smooth-ish image so the edge weights are not vanishingly small
    img = 0.4 + 0.15 * jax.random.uniform(k_img, (N, C, H, W), dtype=jnp.float32)
    flow = jax.random.normal(k_flow, (N, 2, H, W), dtype=jnp.float32)

    configs = [
        dict(weight=1.0, abs_fun="exp", edge_constant=150.0, order=1),
        dict(weight=0.5, abs_fun="gauss", edge_constant=10.0, order=2),
        dict(weight=2.0, abs_fun="exp", edge_constant=20.0, order=2),
    ]

    ok = True
    for cfg in configs:
        ref = jax.block_until_ready(_reference(img, flow, **cfg))
        # (tile_h, split_h): auto single tile; 2 tiles (halo carry); H-split (seam fix)
        for th, sp in ((None, False), (8, False), (8, True)):
            out = jax.block_until_ready(
                bilateral_smooth(img, flow, tile_h=th, split_h=sp, **cfg))
            if not jnp.allclose(out, ref, rtol=2e-4, atol=1e-8):
                ok = False
                print(f"MISMATCH cfg={cfg} tile_h={th} split={sp}: "
                      f"kernel={float(out)} ref={float(ref)}")

    # H not a multiple of 8 exercises the pure-JAX tail correction path
    H2 = 20
    img2 = 0.4 + 0.15 * jax.random.uniform(k_img, (N, C, H2, W), dtype=jnp.float32)
    flow2 = jax.random.normal(k_flow, (N, 2, H2, W), dtype=jnp.float32)
    cfg2 = dict(weight=1.0, abs_fun="exp", edge_constant=20.0, order=2)
    ref2 = jax.block_until_ready(_reference(img2, flow2, **cfg2))
    out2 = jax.block_until_ready(bilateral_smooth(img2, flow2, **cfg2))
    if not jnp.allclose(out2, ref2, rtol=2e-4, atol=1e-8):
        ok = False
        print(f"MISMATCH tail path: kernel={float(out2)} ref={float(ref2)}")

    # weight == 0 fast path (BaseLoss returns 0)
    z = bilateral_smooth(img, flow, weight=0, abs_fun="exp", edge_constant=1.0, order=1)
    if float(z) != 0.0:
        ok = False
        print("MISMATCH weight=0 path")

    if ok:
        print("KERNEL_OK")
</pallas_src>

<mosaic_0001>
module attributes {stable_mosaic.version = 11 : i64} {
  func.func @_bilateral_smooth_kernel(%arg0: i32, %arg1: i32, %arg2: i32, %arg3: memref<1x4x16x16xf32, #tpu.memory_space<vmem>>, %arg4: memref<1x2x16x16xf32, #tpu.memory_space<vmem>>, %arg5: memref<1x1x2x16xf32, #tpu.memory_space<vmem>>, %arg6: memref<4x1x16xf32, #tpu.memory_space<vmem>>, %arg7: memref<2x1x16xf32, #tpu.memory_space<vmem>>) attributes {dimension_semantics = [#tpu.dimension_semantics<parallel>, #tpu.dimension_semantics<parallel>, #tpu.dimension_semantics<arbitrary>], iteration_bounds = array<i64: 1, 2, 1>, scalar_prefetch = 0 : i64, scratch_operands = 2 : i64, tpu.core_type = #tpu.core_type<tc>, window_params = [{transform_indices = @transform_0, window_bounds = array<i64: 1, 4, 16, 16>}, {transform_indices = @transform_1, window_bounds = array<i64: 1, 2, 16, 16>}, {transform_indices = @transform_2, window_bounds = array<i64: 1, 1, 2, 16>}]} {
    %c0 = arith.constant 0 : index
    %c0_0 = arith.constant 0 : index
    %c0_1 = arith.constant 0 : index
    %c0_2 = arith.constant 0 : index
    %0 = vector.load %arg3[%c0, %c0_0, %c0_1, %c0_2] : memref<1x4x16x16xf32, #tpu.memory_space<vmem>>, vector<1x4x16x16xf32>
    %1 = vector.shape_cast %0 : vector<1x4x16x16xf32> to vector<4x16x16xf32>
    %c0_3 = arith.constant 0 : index
    %c0_4 = arith.constant 0 : index
    %c0_5 = arith.constant 0 : index
    %c0_6 = arith.constant 0 : index
    %2 = vector.load %arg4[%c0_3, %c0_4, %c0_5, %c0_6] : memref<1x2x16x16xf32, #tpu.memory_space<vmem>>, vector<1x2x16x16xf32>
    %3 = vector.shape_cast %2 : vector<1x2x16x16xf32> to vector<2x16x16xf32>
    %c0_i32 = arith.constant 0 : i32
    %4 = arith.cmpi eq, %arg2, %c0_i32 : i32
    %5 = arith.extui %4 : i1 to i32
    %c0_i32_7 = arith.constant 0 : i32
    %6 = arith.cmpi ne, %5, %c0_i32_7 : i32
    scf.if %6 {
      %cst_37 = arith.constant 0.000000e+00 : f32
      %59 = vector.broadcast %cst_37 : f32 to vector<2x16xf32>
      %c0_38 = arith.constant 0 : index
      %c0_39 = arith.constant 0 : index
      %c0_40 = arith.constant 0 : index
      %c0_41 = arith.constant 0 : index
      %60 = vector.load %arg5[%c0_38, %c0_39, %c0_40, %c0_41] : memref<1x1x2x16xf32, #tpu.memory_space<vmem>>, vector<1x1x2x16xf32>
      %61 = vector.shape_cast %60 : vector<1x1x2x16xf32> to vector<2x16xf32>
      %62 = vector.shape_cast %59 : vector<2x16xf32> to vector<1x1x2x16xf32>
      tpu.vector_store %arg5[%c0_38, %c0_39, %c0_40, %c0_41], %62 {strides = array<i32>} : memref<1x1x2x16xf32, #tpu.memory_space<vmem>>, vector<1x1x2x16xf32>,
    } else {
    }
    %c0_i32_8 = arith.constant 0 : i32
    %7 = arith.cmpi sgt, %arg2, %c0_i32_8 : i32
    %8 = arith.extui %7 : i1 to i32
    %c0_i32_9 = arith.constant 0 : i32
    %9 = arith.cmpi ne, %8, %c0_i32_9 : i32
    scf.if %9 {
      %c0_37 = arith.constant 0 : index
      %c0_38 = arith.constant 0 : index
      %c0_39 = arith.constant 0 : index
      %59 = vector.load %arg6[%c0_37, %c0_38, %c0_39] : memref<4x1x16xf32, #tpu.memory_space<vmem>>, vector<4x1x16xf32>
      %c0_40 = arith.constant 0 : index
      %c0_41 = arith.constant 0 : index
      %c0_42 = arith.constant 0 : index
      %60 = vector.load %arg7[%c0_40, %c0_41, %c0_42] : memref<2x1x16xf32, #tpu.memory_space<vmem>>, vector<2x1x16xf32>
      %61 = vector.extract_strided_slice %1 {offsets = [0, 0, 0], sizes = [4, 1, 16], strides = [1, 1, 1]} : vector<4x16x16xf32> to vector<4x1x16xf32>
      %62 = arith.subf %61, %59 : vector<4x1x16xf32>
      %63 = math.absf %62 : vector<4x1x16xf32>
      %cst_43 = arith.constant dense<0.000000e+00> : vector<1x16xf32>
      %64 = vector.multi_reduction <add>, %63, %cst_43 [0] : vector<4x1x16xf32> to vector<1x16xf32>
      %cst_44 = arith.constant -3.750000e+01 : f32
      %65 = vector.broadcast %cst_44 : f32 to vector<1x16xf32>
      %66 = arith.mulf %65, %64 : vector<1x16xf32>
      %67 = math.exp %66 : vector<1x16xf32>
      %68 = vector.extract_strided_slice %3 {offsets = [0, 0, 0], sizes = [2, 1, 16], strides = [1, 1, 1]} : vector<2x16x16xf32> to vector<2x1x16xf32>
      %69 = arith.subf %68, %60 : vector<2x1x16xf32>
      %70 = arith.mulf %69, %69 : vector<2x1x16xf32>
      %cst_45 = arith.constant 9.99999997E-7 : f32
      %71 = vector.broadcast %cst_45 : f32 to vector<2x1x16xf32>
      %72 = arith.addf %70, %71 : vector<2x1x16xf32>
      %73 = math.sqrt %72 : vector<2x1x16xf32>
      %cst_46 = arith.constant dense<0.000000e+00> : vector<1x16xf32>
      %74 = vector.multi_reduction <add>, %73, %cst_46 [0] : vector<2x1x16xf32> to vector<1x16xf32>
      %c0_47 = arith.constant 0 : index
      %c0_48 = arith.constant 0 : index
      %c1 = arith.constant 1 : index
      %c0_49 = arith.constant 0 : index
      %75 = vector.load %arg5[%c0_47, %c0_48, %c1, %c0_49] : memref<1x1x2x16xf32, #tpu.memory_space<vmem>>, vector<1x1x1x16xf32>
      %76 = vector.shape_cast %75 : vector<1x1x1x16xf32> to vector<1x16xf32>
      %77 = arith.mulf %67, %74 : vector<1x16xf32>
      %cst_50 = arith.constant dense<0.000000e+00> : vector<16xf32>
      %78 = vector.multi_reduction <add>, %77, %cst_50 [0] : vector<1x16xf32> to vector<16xf32>
      %79 = vector.shape_cast %78 : vector<16xf32> to vector<1x16xf32>
      %80 = arith.addf %76, %79 : vector<1x16xf32>
      %c0_51 = arith.constant 0 : index
      %c0_52 = arith.constant 0 : index
      %c1_53 = arith.constant 1 : index
      %c0_54 = arith.constant 0 : index
      %81 = vector.load %arg5[%c0_51, %c0_52, %c1_53, %c0_54] : memref<1x1x2x16xf32, #tpu.memory_space<vmem>>, vector<1x1x1x16xf32>
      %82 = vector.shape_cast %81 : vector<1x1x1x16xf32> to vector<1x16xf32>
      %83 = vector.shape_cast %80 : vector<1x16xf32> to vector<1x1x1x16xf32>
      tpu.vector_store %arg5[%c0_51, %c0_52, %c1_53, %c0_54], %83 {strides = array<i32>} : memref<1x1x2x16xf32, #tpu.memory_space<vmem>>, vector<1x1x1x16xf32>,
    } else {
    }
    %c15_i32 = arith.constant 15 : i32
    %10 = tpu.dynamic_rotate %1 by %c15_i32 dim 2 : vector<4x16x16xf32>, i32 -> vector<4x16x16xf32>
    %11 = arith.subf %10, %1 : vector<4x16x16xf32>
    %12 = math.absf %11 : vector<4x16x16xf32>
    %cst = arith.constant dense<0.000000e+00> : vector<16x16xf32>
    %13 = vector.multi_reduction <add>, %12, %cst [0] : vector<4x16x16xf32> to vector<16x16xf32>
    %cst_10 = arith.constant -3.750000e+01 : f32
    %14 = vector.broadcast %cst_10 : f32 to vector<16x16xf32>
    %15 = arith.mulf %14, %13 : vector<16x16xf32>
    %16 = math.exp %15 : vector<16x16xf32>
    %c15_i32_11 = arith.constant 15 : i32
    %17 = tpu.dynamic_rotate %3 by %c15_i32_11 dim 2 : vector<2x16x16xf32>, i32 -> vector<2x16x16xf32>
    %18 = arith.subf %17, %3 : vector<2x16x16xf32>
    %19 = arith.mulf %18, %18 : vector<2x16x16xf32>
    %cst_12 = arith.constant 9.99999997E-7 : f32
    %20 = vector.broadcast %cst_12 : f32 to vector<2x16x16xf32>
    %21 = arith.addf %19, %20 : vector<2x16x16xf32>
    %22 = math.sqrt %21 : vector<2x16x16xf32>
    %cst_13 = arith.constant dense<0.000000e+00> : vector<16x16xf32>
    %23 = vector.multi_reduction <add>, %22, %cst_13 [0] : vector<2x16x16xf32> to vector<16x16xf32>
    %24 = arith.mulf %16, %23 : vector<16x16xf32>
    %cst_14 = arith.constant dense<0.000000e+00> : vector<16xf32>
    %25 = vector.multi_reduction <add>, %24, %cst_14 [0] : vector<16x16xf32> to vector<16xf32>
    %26 = vector.shape_cast %25 : vector<16xf32> to vector<1x16xf32>
    %c15_i32_15 = arith.constant 15 : i32
    %27 = tpu.dynamic_rotate %1 by %c15_i32_15 dim 1 : vector<4x16x16xf32>, i32 -> vector<4x16x16xf32>
    %28 = arith.subf %27, %1 : vector<4x16x16xf32>
    %29 = math.absf %28 : vector<4x16x16xf32>
    %cst_16 = arith.constant dense<0.000000e+00> : vector<16x16xf32>
    %30 = vector.multi_reduction <add>, %29, %cst_16 [0] : vector<4x16x16xf32> to vector<16x16xf32>
    %cst_17 = arith.constant -3.750000e+01 : f32
    %31 = vector.broadcast %cst_17 : f32 to vector<16x16xf32>
    %32 = arith.mulf %31, %30 : vector<16x16xf32>
    %33 = math.exp %32 : vector<16x16xf32>
    %c15_i32_18 = arith.constant 15 : i32
    %34 = tpu.dynamic_rotate %3 by %c15_i32_18 dim 1 : vector<2x16x16xf32>, i32 -> vector<2x16x16xf32>
    %35 = arith.subf %34, %3 : vector<2x16x16xf32>
    %36 = arith.mulf %35, %35 : vector<2x16x16xf32>
    %cst_19 = arith.constant 9.99999997E-7 : f32
    %37 = vector.broadcast %cst_19 : f32 to vector<2x16x16xf32>
    %38 = arith.addf %36, %37 : vector<2x16x16xf32>
    %39 = math.sqrt %38 : vector<2x16x16xf32>
    %cst_20 = arith.constant dense<0.000000e+00> : vector<16x16xf32>
    %40 = vector.multi_reduction <add>, %39, %cst_20 [0] : vector<2x16x16xf32> to vector<16x16xf32>
    %41 = arith.mulf %33, %40 : vector<16x16xf32>
    %cst_21 = arith.constant dense<0.000000e+00> : vector<16xf32>
    %42 = vector.multi_reduction <add>, %41, %cst_21 [0] : vector<16x16xf32> to vector<16xf32>
    %43 = vector.shape_cast %42 : vector<16xf32> to vector<1x16xf32>
    %44 = vector.extract_strided_slice %41 {offsets = [15, 0], sizes = [1, 16], strides = [1, 1]} : vector<16x16xf32> to vector<1x16xf32>
    %cst_22 = arith.constant dense<0.000000e+00> : vector<16xf32>
    %45 = vector.multi_reduction <add>, %44, %cst_22 [0] : vector<1x16xf32> to vector<16xf32>
    %46 = vector.shape_cast %45 : vector<16xf32> to vector<1x16xf32>
    %47 = arith.subf %43, %46 : vector<1x16xf32>
    %c0_23 = arith.constant 0 : index
    %c0_24 = arith.constant 0 : index
    %c0_25 = arith.constant 0 : index
    %c0_26 = arith.constant 0 : index
    %48 = vector.load %arg5[%c0_23, %c0_24, %c0_25, %c0_26] : memref<1x1x2x16xf32, #tpu.memory_space<vmem>>, vector<1x1x2x16xf32>
    %49 = vector.shape_cast %48 : vector<1x1x2x16xf32> to vector<2x16xf32>
    %50 = tpu.concatenate %26, %47 in 0 : vector<1x16xf32>, vector<1x16xf32> -> vector<2x16xf32>
    %51 = arith.addf %49, %50 : vector<2x16xf32>
    %c0_27 = arith.constant 0 : index
    %c0_28 = arith.constant 0 : index
    %c0_29 = arith.constant 0 : index
    %c0_30 = arith.constant 0 : index
    %52 = vector.load %arg5[%c0_27, %c0_28, %c0_29, %c0_30] : memref<1x1x2x16xf32, #tpu.memory_space<vmem>>, vector<1x1x2x16xf32>
    %53 = vector.shape_cast %52 : vector<1x1x2x16xf32> to vector<2x16xf32>
    %54 = vector.shape_cast %51 : vector<2x16xf32> to vector<1x1x2x16xf32>
    tpu.vector_store %arg5[%c0_27, %c0_28, %c0_29, %c0_30], %54 {strides = array<i32>} : memref<1x1x2x16xf32, #tpu.memory_space<vmem>>, vector<1x1x2x16xf32>,
    %55 = vector.extract_strided_slice %1 {offsets = [0, 15, 0], sizes = [4, 1, 16], strides = [1, 1, 1]} : vector<4x16x16xf32> to vector<4x1x16xf32>
    %c0_31 = arith.constant 0 : index
    %c0_32 = arith.constant 0 : index
    %c0_33 = arith.constant 0 : index
    %56 = vector.load %arg6[%c0_31, %c0_32, %c0_33] : memref<4x1x16xf32, #tpu.memory_space<vmem>>, vector<4x1x16xf32>
    tpu.vector_store %arg6[%c0_31, %c0_32, %c0_33], %55 {strides = array<i32>} : memref<4x1x16xf32, #tpu.memory_space<vmem>>, vector<4x1x16xf32>,
    %57 = vector.extract_strided_slice %3 {offsets = [0, 15, 0], sizes = [2, 1, 16], strides = [1, 1, 1]} : vector<2x16x16xf32> to vector<2x1x16xf32>
    %c0_34 = arith.constant 0 : index
    %c0_35 = arith.constant 0 : index
    %c0_36 = arith.constant 0 : index
    %58 = vector.load %arg7[%c0_34, %c0_35, %c0_36] : memref<2x1x16xf32, #tpu.memory_space<vmem>>, vector<2x1x16xf32>
    tpu.vector_store %arg7[%c0_34, %c0_35, %c0_36], %57 {strides = array<i32>} : memref<2x1x16xf32, #tpu.memory_space<vmem>>, vector<2x1x16xf32>,
    return
  }
  func.func @transform_0(%arg0: i32, %arg1: i32, %arg2: i32) -> (i32, i32, i32, i32) {
    %c1_i32 = arith.constant 1 : i32
    %0 = arith.muli %arg0, %c1_i32 : i32
    %1 = arith.addi %0, %arg2 : i32
    %c0_i32 = arith.constant 0 : i32
    %c0_i32_0 = arith.constant 0 : i32
    %c0_i32_1 = arith.constant 0 : i32
    return %arg1, %c0_i32, %1, %c0_i32_0 : i32, i32, i32, i32
  }
  func.func @transform_1(%arg0: i32, %arg1: i32, %arg2: i32) -> (i32, i32, i32, i32) {
    %c1_i32 = arith.constant 1 : i32
    %0 = arith.muli %arg0, %c1_i32 : i32
    %1 = arith.addi %0, %arg2 : i32
    %c0_i32 = arith.constant 0 : i32
    %c0_i32_0 = arith.constant 0 : i32
    %c0_i32_1 = arith.constant 0 : i32
    return %arg1, %c0_i32, %1, %c0_i32_0 : i32, i32, i32, i32
  }
  func.func @transform_2(%arg0: i32, %arg1: i32, %arg2: i32) -> (i32, i32, i32, i32) {
    %c0_i32 = arith.constant 0 : i32
    %c0_i32_0 = arith.constant 0 : i32
    %c0_i32_1 = arith.constant 0 : i32
    return %arg0, %arg1, %c0_i32, %c0_i32_0 : i32, i32, i32, i32
  }
}

</mosaic_0001>

<bundles_post_ra>
// kernel: tpu_custom_call.1
= control target key start
LH: loop header
LB: loop body
LE: loop exit
PB: predicated region body
PF: predicated region fallthrough
CT: control target
= control target key end

     0   :  { %7 = vsyncpa [#allocation5], 0  ;;  %s1558_s0 = inlined_call_operand.hbm [shape: f32[2,4,16,16], index: 0, kind: input, shape index: {}]   ;;  %s1559_s1 = inlined_call_operand.hbm [shape: f32[2,2,16,16], index: 1, kind: input, shape index: {}]   ;;  %s1560_s2 = inlined_call_operand.hbm [shape: f32[1,2,2,16], index: 2, kind: output, shape index: {}]  }
   0x1   :  { %9 = vsyncpa [#allocation5 + $0x1], 0 }
   0x2   :  { %10 = vsyncpa [#allocation8], 0 }
   0x3   :  { %12 = vsyncpa [#allocation8 + $0x1], 0 }
   0x4   :  { %13 = vsyncpa [#allocation6], 0 }
   0x5   :  { %15 = vsyncpa [#allocation6 + $0x1], 0  ;;  %s1095_s9 = smov 0   ;;  %s1097_s10 = smov 0  }
   0x6   :  { %s1099_s11 = smov 0   ;;  %s1101_s12 = smov 0  }
   0x7   :  { %s1103_s13 = smov 0   ;;  %s1105_s14 = smov 0  }
   0x8 LB: > { %s806_s15 = sadd.s32 4294967295, %s1069_s14   ;;  %s807_s16 = sadd.s32 4294967294, %s1069_s14   ;;  %s1069_s14 = sphi %s1105_s14, %s21_s14   ;;  %s1065_s13 = sphi %s1103_s13, %s1578_s13   ;;  %s1061_s12 = sphi %s1101_s12, %s1577_s12   ;;  %s1057_s11 = sphi %s1099_s11, %s1576_s11   ;;  %s1053_s10 = sphi %s1097_s10, %s1575_s10   ;;  %s1049_s9 = sphi %s1095_s9, %s1574_s9  }
   0x9   : > { %s36_s17 = sadd.s32 1, %s1065_s13  ;;  %s51_s18 = sadd.s32 1, %s1057_s11 }
   0xa   : > { %p38_p0 = scmp.ge.s32.totalorder %s36_s17, 2  ;;  %p58_p1 = scmp.ne.s32.totalorder %s1057_s11, %s1053_s10 }
   0xb   : > { %p59_p2 = scmp.eq.s32.totalorder %s1069_s14, 0  ;;  %p64_p3 = scmp.ne.s32.totalorder %s1053_s10, %s1049_s9 }
   0xc   : > { %s1580_s17 = smov (%p38_p0, %s36_s17), 0  ;;  %p65_p5 = scmp.eq.s32.totalorder %s806_s15, 0 }
   0xd   : > { %p1136_p4 = por %p59_p2, %p58_p1  ;;  %s46_s20 = ssub.s32 %s1065_s13, %s1580_s17 }
   0xe   : > { %p120_p6 = scmp.eq.s32.totalorder %s806_s15, 1  ;;  %p49_p7 = scmp.eq.s32.totalorder %s46_s20, 0 }
   0xf   : > { %p1142_p8 = por %p65_p5, %p64_p3  ;;  %p126_p10 = scmp.eq.s32.totalorder %s807_s16, 1 }
  0x10   : > { %p1146_p9 = por %p120_p6, %p58_p1  ;;  %p843_p13 = scmp.lt.s32.totalorder %s1069_s14, 2 }
  0x11   : > { %s1564_s21 = scalar_select %p1142_p8, 1, 0 }
  0x12   : > { %s1565_s22 = scalar_select %p1146_p9, 1, 0 }
  0x13   : > { %s1151_s23 = scalar_select %p49_p7, %s1057_s11, %s51_s18  }
  0x14   : > { %p1153_p11 = por %p126_p10, %p64_p3  ;;  %s1160_s25 = sand.u32 1, %s1057_s11  }
  0x15   : > { %s810_s26 = sshll.u32 %s1160_s25, 6  ;;  %s824_s27 = sshll.u32 %s1065_s13, 10 }
  0x16   : > { %s1566_s24 = scalar_select %p1153_p11, 1, 0 }
  0x17   : > { %s1167_s30 = scalar_lea.hbm %s1558_s0, %s824_s27  ;;  %s150_s3 = scalar_lea.vmem [#allocation4], %s810_s26 }
  0x18   : > { %s160_s4 = sshll.u32 %s150_s3, 4  ;;  %p1173_p0 = pnand %p843_p13, %p1136_p4  ;;  %s1169_s4 = int_to_ptr.vmem [resolvable:$true] %s160_s4 }
  0x19   : > { %s147_s6 = scalar_lea.sflag [#allocation5], %s1160_s25  ;;  %s923_s7 = scalar_lea.hbm %s1167_s30, 1024 }
  0x1a   : > { %p924_p2 = scmp.ne.s32.totalorder %s1167_s30, %s923_s7  ;;  %p925_p3 = pneg %p1173_p0 }
  0x1b   : > { %s928_s16 = scalar_lea.hbm %s1558_s0, 2048  ;;  %p929_p4 = scmp.lt.u32.totalorder %s1167_s30, %s1558_s0 }
  0x1c   : > { %p926_p5 = pnand %p925_p3, %p924_p2  ;;  %p930_p7 = scmp.lt.u32.totalorder %s928_s16, %s923_s7 }
  0x1d   : > { %p932_p13 = scmp.lt.u32.totalorder %s923_s7, %s1167_s30 }
  0x1e   : > { %p927_p6 = pneg %p926_p5  ;;  %p931_p10 = por %p930_p7, %p929_p4 }
  0x20   : > { %p933_p12 = por %p932_p13, %p931_p10 }
  0x22   : > { %p934_p1 = pnand %p933_p12, %p927_p6 }
  0x24   : > { %937 = shalt.err (!%p934_p1)
}
  0x25   : > { %s938_s20 = scalar_lea.vmem %s1169_s4, 1024  ;;  %s1071_s26 = smov [#allocation4]  }
  0x26   : > { %p939_p2 = scmp.ne.s32.totalorder %s1169_s4, %s938_s20  ;;  %s943_s27 = sshll.u32 %s1071_s26, 4  ;;  %s944_s27 = int_to_ptr.vmem [resolvable:$false] %s943_s27 }
  0x27   : > { %s945_s28 = scalar_lea.vmem %s944_s27, 2048  ;;  %p946_p9 = scmp.lt.s32.totalorder %s1169_s4, %s944_s27 }
  0x28   : > { %p941_p5 = pnand %p939_p2, %p925_p3  ;;  %p947_p4 = scmp.lt.s32.totalorder %s945_s28, %s938_s20 }
  0x2a   : > { %p942_p11 = pneg %p941_p5  ;;  %p948_p7 = por %p947_p4, %p946_p9 }
  0x2c   : > { %p949_p10 = pnand %p948_p7, %p942_p11 }
  0x2e   : > { %952 = shalt.err (!%p949_p10)
}
  0x2f   : > { %s1072_s29 = smov 128   ;;  %s1073_s3 = smov 8  }
  0x30   : > { %835 = dma.hbm_to_vmem [thread:$0]  (!%p1173_p0), %s1167_s30, 1024, %s1169_s4, %s147_s6, %s1072_s29, %s1072_s29, %s1073_s3  }
  0x31   : > { %p192_p9 = scmp.lt.s32.totalorder %s1069_s14, 3  ;;  %s813_s7 = sshll.u32 %s1160_s25, 5 }
  0x32   : > { %s825_s8 = sshll.u32 %s1065_s13, 9  ;;  %p1568_p11 = scmp.ge.s32.totalorder %s1069_s14, 1 }
  0x33   : > { %s1221_s19 = scalar_lea.hbm %s1559_s1, %s825_s8  ;;  %s174_s20 = scalar_lea.vmem [#allocation7], %s813_s7 }
  0x34   : > { %p1214_p12 = pnand %p1568_p11, %p192_p9  ;;  %s184_s26 = sshll.u32 %s174_s20, 4  ;;  %s1223_s26 = int_to_ptr.vmem [resolvable:$true] %s184_s26 }
  0x35   : > { %s171_s30 = scalar_lea.sflag [#allocation8], %s1160_s25  ;;  %s953_s4 = scalar_lea.hbm %s1221_s19, 512 }
  0x36   : > { %p954_p1 = scmp.ne.s32.totalorder %s1221_s19, %s953_s4  ;;  %s958_s28 = scalar_lea.hbm %s1559_s1, 1024 }
  0x37   : > { %p959_p2 = scmp.lt.u32.totalorder %s1221_s19, %s1559_s1  ;;  %p960_p5 = scmp.lt.u32.totalorder %s958_s28, %s953_s4 }
  0x38   : > { %p956_p6 = pnand %p954_p1, %p925_p3  ;;  %p962_p7 = scmp.lt.u32.totalorder %s953_s4, %s1221_s19 }
  0x39   : > { %p961_p4 = por %p960_p5, %p959_p2 }
  0x3a   : > { %p957_p13 = pneg %p956_p6 }
  0x3b   : > { %p963_p10 = por %p962_p7, %p961_p4 }
  0x3d   : > { %p964_p9 = pnand %p963_p10, %p957_p13 }
  0x3f   : > { %967 = shalt.err (!%p964_p9)
}
  0x40   : > { %s968_s7 = scalar_lea.vmem %s1223_s26, 512  ;;  %s1074_s18 = smov [#allocation7]  }
  0x41   : > { %p969_p11 = scmp.ne.s32.totalorder %s1223_s26, %s968_s7  ;;  %s973_s20 = sshll.u32 %s1074_s18, 4  ;;  %s974_s20 = int_to_ptr.vmem [resolvable:$false] %s973_s20 }
  0x42   : > { %s975_s6 = scalar_lea.vmem %s974_s20, 1024  ;;  %p976_p8 = scmp.lt.s32.totalorder %s1223_s26, %s974_s20 }
  0x43   : > { %p971_p1 = pnand %p969_p11, %p925_p3  ;;  %p977_p2 = scmp.lt.s32.totalorder %s975_s6, %s968_s7 }
  0x45   : > { %p972_p6 = pneg %p971_p1  ;;  %p978_p5 = por %p977_p2, %p976_p8 }
  0x47   : > { %p979_p4 = pnand %p978_p5, %p972_p6 }
  0x49   : > { %982 = shalt.err (!%p979_p4)
}
  0x4a   : > { %838 = dma.hbm_to_vmem [thread:$0]  (!%p1173_p0), %s1221_s19, 512, %s1223_s26, %s171_s30, %s1072_s29, %s1072_s29, %s1073_s3  }
  0x4b   : > { %196 = sbr.rel (%p1214_p12) target bundleno = 517 (0x205), region = 28  ;;  %s1257_s4 = sand.u32 (!%p1214_p12), 1, %s1053_s10  }
  0x4c   : > { %s817_s27 = sshll.u32 (!%p1214_p12), %s1257_s4, 6  ;;  %s199_s28 = scalar_lea.sflag (!%p1214_p12), [#allocation5], %s1257_s4 }
  0x4d   : > { %s1261_s5 = scalar_lea.vmem (!%p1214_p12), [#allocation4], %s817_s27  ;;  %p1570_p8 = scmp.ne.s32.totalorder (!%p1214_p12), %s1564_s21, 0 }
  0x52   : > { %1036 = dma.done.wait (%p1570_p8), %s199_s28, 1024  }
  0x53   : > { %1038 = vsyncadd (%p1570_p8), %s199_s28, 4294966272  ;;  %s818_s25 = sshll.u32 %s1257_s4, 5  ;;  %s208_s29 = scalar_lea.sflag [#allocation8], %s1257_s4 }
  0x54   : > { %s211_s3 = scalar_lea.vmem [#allocation7], %s818_s25 }
  0x55   : > { %1040 = dma.done.wait (%p1570_p8), %s208_s29, 512  }
  0x56   : > { %1042 = vsyncadd (%p1570_p8), %s208_s29, 4294966784  ;;  %v1274_v0 = vld [vmem:[%s1261_s5] sm:$0xff]  ;;  %v1277_v1 = vld [vmem:[%s1261_s5 + $0x10] sm:$0xff]  ;;  %s1075_s15 = smov 16   ;;  %s1076_s21 = smov 1   ;;  %v539_v12 = vlaneseq  ;;  %vm566_vm1 = vcmask 130048  }
  0x57   : > { %v1280_v2 = vld [vmem:[%s1261_s5 + $0x8] sm:$0xff]  ;;  %317 = vrot.lane.b32.xlu0 %v1274_v0, %s1075_s15  ;;  %323 = vrot.lane.b32.xlu1 %v1277_v1, %s1075_s15  ;;  %v1287_v3 = vld [vmem:[%s1261_s5 + $0x18] sm:$0xff]  ;;  %v531_v14 = vrot.slane %v1274_v0, 1  ;;  %v532_v16 = vrot.slane %v1277_v1, 1  ;;  %vm316_vm10 = vcmask 1047680   ;;  %s819_s19 = sshll.u32 %s1257_s4, 1 }
  0x58   : > { %v1290_v4 = vld [vmem:[%s1261_s5 + $0x28] sm:$0xff]  ;;  %v1294_v6 = vld [vmem:[%s211_s3 + $0x18] sm:$0xff]  ;;  %v1304_v8 = vld [vmem:[%s1261_s5 + $0x20] sm:$0xff]  ;;  %v540_v13 = vshrl.u32 %v539_v12, 7  ;;  %v535_v15 = vrot.slane %v1280_v2, 1  ;;  %v536_v17 = vrot.slane %v1287_v3, 1 }
  0x59   : > { %v1292_v5 = vld [vmem:[%s211_s3 + $0x8] sm:$0xff]  ;;  %v1297_v7 = vld [vmem:[%s1261_s5 + $0x38] sm:$0xff]  ;;  %v1310_v9 = vld [vmem:[%s211_s3] sm:$0xff]  ;;  %v590_v24 = vrot.slane %v1294_v6, 1  ;;  %v533_v25 = vrot.slane %v1304_v8, 1  ;;  %v537_v26 = vrot.slane %v1290_v4, 1 }
  0x5a   : > { %v1316_v10 = vld [vmem:[%s211_s3 + $0x10] sm:$0xff]  ;;  %vm541_vm0 = vcmp.lt.s32.totalorder %v540_v13, 7  ;;  %v587_v18 = vrot.slane %v1310_v9, 1  ;;  %v589_v19 = vrot.slane %v1292_v5, 1  ;;  %v538_v36 = vrot.slane %v1297_v7, 1  ;;  %s1443_s26 = scalar_lea.vmem [#allocation9], %s819_s19 }
  0x5b   : > { %320 = vrot.lane.b32.xlu0 %v1280_v2, %s1075_s15  ;;  %326 = vrot.lane.b32.xlu1 %v1287_v3, %s1075_s15  ;;  %v1323_v11 = vld [vmem:[%s1261_s5 + $0x30] sm:$0xff]  ;;  %v542_v20 = vsel %vm541_vm0, %v531_v14, %v535_v15  ;;  %v543_v21 = vsel %vm541_vm0, %v532_v16, %v536_v17  ;;  %v588_v23 = vrot.slane %v1316_v10, 1  ;;  %v546_v27 = vsel %vm541_vm0, %v535_v15, %v531_v14  ;;  %s1078_s30 = smov 127   ;;  %s821_s8 = sshll.u32 %s1061_s12, 5 }
  0x5c   : > { %v591_v22 = vsel %vm541_vm0, %v587_v18, %v589_v19  ;;  %v547_v28 = vsel %vm541_vm0, %v536_v17, %v532_v16  ;;  %v550_v29 = vsub.f32 %v542_v20, %v1274_v0  ;;  %v552_v30 = vsub.f32 %v543_v21, %v1277_v1  ;;  %s692_s16 = sshll.u32 %s1443_s26, 4  ;;  %s1507_s20 = scalar_lea.hbm %s1560_s2, %s821_s8  ;;  %s1509_s16 = int_to_ptr.vmem [resolvable:$true] %s692_s16 }
  0x5d   : > { %v593_v31 = vsel %vm541_vm0, %v589_v19, %v587_v18  ;;  %v595_v32 = vsub.f32 %v591_v22, %v1310_v9  ;;  %v592_v33 = vsel %vm541_vm0, %v588_v23, %v590_v24  ;;  %v594_v34 = vsel %vm541_vm0, %v590_v24, %v588_v23  ;;  %s677_s6 = scalar_lea.sflag [#allocation6], %s1257_s4  ;;  %s983_s27 = scalar_lea.vmem %s1509_s16, 32 }
  0x5e   : > { %v534_v35 = vrot.slane %v1323_v11, 1  ;;  %v544_v37 = vsel %vm541_vm0, %v533_v25, %v537_v26  ;;  %v551_v38 = vsub.f32 %v546_v27, %v1280_v2  ;;  %v553_v39 = vsub.f32 %v547_v28, %v1287_v3  ;;  %p984_p0 = scmp.ne.s32.totalorder %s1509_s16, %s983_s27  ;;  %p1571_p3 = scmp.ne.s32.totalorder %s1565_s22, 0 }
  0x5f   : > { %329 = vrot.lane.b32.xlu0 %v1304_v8, %s1075_s15  ;;  %332 = vrot.lane.b32.xlu1 %v1290_v4, %s1075_s15  ;;  %v596_v40 = vsub.f32 %v593_v31, %v1292_v5  ;;  %v548_v41 = vsel %vm541_vm0, %v537_v26, %v533_v25  ;;  %v599_v42 = vmul.f32 %v595_v32, %v595_v32  ;;  %v558_v45 = vand.u32 2147483647, %v550_v29  ;;  %s1079_s12 = smov [#allocation9]  }
  0x60   : > { %v597_v43 = vsub.f32 %v592_v33, %v1316_v10  ;;  %v598_v44 = vsub.f32 %v594_v34, %v1294_v6  ;;  %v560_v46 = vand.u32 2147483647, %v552_v30  ;;  %v554_v47 = vsub.f32 %v544_v37, %v1304_v8  ;;  %p985_p12 = pnand %p984_p0, %p1571_p3  ;;  %s987_s28 = sshll.u32 %s1079_s12, 4  ;;  %s988_s28 = int_to_ptr.vmem [resolvable:$false] %s987_s28 }
  0x61   : > { %v545_v48 = vsel %vm541_vm0, %v534_v35, %v538_v36  ;;  %v555_v49 = vsub.f32 %v548_v41, %v1290_v4  ;;  %v559_v50 = vand.u32 2147483647, %v551_v38  ;;  %v561_v51 = vand.u32 2147483647, %v553_v39  ;;  %s989_s5 = scalar_lea.vmem %s988_s28, 64  ;;  %p990_p7 = scmp.lt.s32.totalorder %s1509_s16, %s988_s28 }
  0x62   : > { %v600_v52 = vmul.f32 %v596_v40, %v596_v40  ;;  %v549_v53 = vsel %vm541_vm0, %v538_v36, %v534_v35  ;;  %v603_v54 = vadd.f32 1e-06, %v599_v42  ;;  %v601_v55 = vmul.f32 %v597_v43, %v597_v43  ;;  %p986_p13 = pneg %p985_p12  ;;  %p991_p10 = scmp.lt.s32.totalorder %s989_s5, %s983_s27 }
  0x63   : > { %434 = vrot.lane.b32.xlu0 %v1310_v9, %s1075_s15  ;;  %437 = vrot.lane.b32.xlu1 %v1292_v5, %s1075_s15  ;;  %v602_v56 = vmul.f32 %v598_v44, %v598_v44  ;;  %v556_v57 = vsub.f32 %v545_v48, %v1323_v11  ;;  %v562_v58 = vand.u32 2147483647, %v554_v47  ;;  %v567_v59 = vsel %vm566_vm1, %v558_v45, 0.0 }
  0x64   : > { %v568_v60 = vsel %vm566_vm1, %v560_v46, 0.0  ;;  %v557_v61 = vsub.f32 %v549_v53, %v1297_v7  ;;  %v563_v62 = vand.u32 2147483647, %v555_v49  ;;  %v574_v63 = vsel %vm566_vm1, %v559_v50, 0.0  ;;  %p992_p9 = por %p991_p10, %p990_p7 }
  0x65   : > { %v575_v12 = vsel %vm566_vm1, %v561_v51, 0.0  ;;  %v604_v14 = vadd.f32 1e-06, %v600_v52  ;;  %v605_v13 = vadd.f32 1e-06, %v601_v55  ;;  %v569_v15 = vadd.f32 %v568_v60, %v567_v59 }
  0x66   : > { %v606_v16 = vadd.f32 1e-06, %v602_v56  ;;  %v564_v17 = vand.u32 2147483647, %v556_v57  ;;  %v570_v18 = vsel %vm566_vm1, %v562_v58, 0.0  ;;  %v576_v19 = vadd.f32 %v575_v12, %v574_v63  ;;  %p993_p11 = pnand %p992_p9, %p986_p13 }
  0x67   : > { %440 = vrot.lane.b32.xlu0 %v1316_v10, %s1075_s15  ;;  %443 = vrot.lane.b32.xlu1 %v1294_v6, %s1075_s15  ;;  %v565_v20 = vand.u32 2147483647, %v557_v61  ;;  %v577_v21 = vsel %vm566_vm1, %v563_v62, 0.0  ;;  %899 = vrsqrt.f32 %v603_v54  ;;  %v571_v22 = vadd.f32 %v570_v18, %v569_v15 }
  0x68   : > { %901 = vrsqrt.f32 %v604_v14  ;;  %v572_v23 = vsel %vm566_vm1, %v564_v17, 0.0  ;;  %v578_v24 = vadd.f32 %v577_v21, %v576_v19  ;;  %vm609_vm2 = vcmp.eq.f32.partialorder %v603_v54, inf }
  0x69   : > { %903 = vrsqrt.f32 %v605_v13  ;;  %v579_v25 = vsel %vm566_vm1, %v565_v20, 0.0  ;;  %v573_v26 = vadd.f32 %v572_v23, %v571_v22  ;;  %vm611_vm3 = vcmp.eq.f32.partialorder %v603_v54, 0.0 }
  0x6a   : > { %905 = vrsqrt.f32 %v606_v16  ;;  %v580_v27 = vadd.f32 %v579_v25, %v578_v24  ;;  %v612_v40 = vand.u32 2147483648, %v603_v54  ;;  %vm616_vm4 = vcmp.eq.f32.partialorder %v604_v14, inf }
  0x6b   : > { %335 = vrot.lane.b32.xlu0 %v1323_v11, %s1075_s15  ;;  %338 = vrot.lane.b32.xlu1 %v1297_v7, %s1075_s15  ;;  %v581_v29 = vmul.f32 -37.5, %v573_v26  ;;  %vm623_vm5 = vcmp.eq.f32.partialorder %v605_v13, inf  ;;  %vm630_vm6 = vcmp.eq.f32.partialorder %v606_v16, inf  ;;  %vm618_vm7 = vcmp.eq.f32.partialorder %v604_v14, 0.0 }
  0x6c   : > { %v582_v31 = vmul.f32 -37.5, %v580_v27  ;;  %v619_v41 = vand.u32 2147483648, %v604_v14  ;;  %vm625_vm8 = vcmp.eq.f32.partialorder %v605_v13, 0.0  ;;  %v626_v42 = vand.u32 2147483648, %v605_v13 }
  0x6d   : > { %v583_v34 = vmul.f32 1.442695, %v581_v29  ;;  %vm632_vm9 = vcmp.eq.f32.partialorder %v606_v16, 0.0  ;;  %v633_v43 = vand.u32 2147483648, %v606_v16  ;;  %vm257_vm11 = vcmask 123904  }
  0x6e   : > { %v585_v35 = vmul.f32 1.442695, %v582_v31  ;;  %vm413_vm12 = vcmask 138248  }
  0x6f   : > { %373 = vrot.lane.b32.xlu0 %v1274_v0, %s1076_s21  ;;  %375 = vrot.lane.b32.xlu1 %v1280_v2, %s1076_s21  ;;  %907 = vpow2.f32 %v583_v34 }
  0x70   : > { %909 = vpow2.f32 %v585_v35 }
  0x71   : > { %v900_v28 = vpop.eup %899 }
  0x72   : > { %v902_v30 = vpop.eup %901  ;;  %v608_v36 = vmul.f32 %v900_v28, %v603_v54 }
  0x73   : > { %377 = vrot.lane.b32.xlu0 %v1277_v1, %s1076_s21  ;;  %379 = vrot.lane.b32.xlu1 %v1287_v3, %s1076_s21  ;;  %v904_v32 = vpop.eup %903  ;;  %v615_v37 = vmul.f32 %v902_v30, %v604_v14 }
  0x74   : > { %v906_v33 = vpop.eup %905  ;;  %v622_v38 = vmul.f32 %v904_v32, %v605_v13  ;;  %v610_v44 = vsel %vm609_vm2, %v603_v54, %v608_v36 }
  0x75   : > { %v629_v39 = vmul.f32 %v906_v33, %v606_v16  ;;  %v617_v45 = vsel %vm616_vm4, %v604_v14, %v615_v37  ;;  %v613_v48 = vsel %vm611_vm3, %v612_v40, %v610_v44 }
  0x76   : > { %v624_v46 = vsel %vm623_vm5, %v605_v13, %v622_v38  ;;  %v620_v49 = vsel %vm618_vm7, %v619_v41, %v617_v45  ;;  %v635_v52 = vsel %vm566_vm1, %v613_v48, 0.0  ;;  %v1077_v45 = vmov 0.0  }
  0x77   : > { %381 = vrot.lane.b32.xlu0 %v1304_v8, %s1076_s21  ;;  %383 = vrot.lane.b32.xlu1 %v1290_v4, %s1076_s21  ;;  %v631_v47 = vsel %vm630_vm6, %v606_v16, %v629_v39  ;;  %v627_v50 = vsel %vm625_vm8, %v626_v42, %v624_v46  ;;  %v638_v55 = vsel %vm566_vm1, %v620_v49, 0.0  ;;  %258 = vst.msk [vmem:[%s1443_s26] sm:$0x3] %vm257_vm11, %v1077_v45  ;;  %vm660_vm5 = vcmask 1040384  }
  0x78   : > { %v634_v51 = vsel %vm632_vm9, %v633_v43, %v631_v47  ;;  %v636_v53 = vsel %vm566_vm1, %v627_v50, 0.0 }
  0x79   : > { %v639_v56 = vsel %vm566_vm1, %v634_v51, 0.0  ;;  %v908_v57 = vpop.eup %907  ;;  %v637_v59 = vadd.f32 %v636_v53, %v635_v52 }
  0x7a   : > { %v910_v58 = vpop.eup %909  ;;  %v640_v60 = vadd.f32 %v639_v56, %v638_v55 }
  0x7b   : > { %462 = vrot.lane.b32.xlu0 %v1310_v9, %s1076_s21  ;;  %464 = vrot.lane.b32.xlu1 %v1292_v5, %s1076_s21  ;;  %v641_v61 = vmul.f32 %v908_v57, %v637_v59 }
  0x7c   : > { %v642_v62 = vmul.f32 %v910_v58, %v640_v60 }
  0x7d   : > { %v643_v54 = vsel %vm566_vm1, %v641_v61, 0.0 }
  0x7e   : > { %v644_v63 = vsel %vm566_vm1, %v642_v62, 0.0 }
  0x7f   : > { %466 = vrot.lane.b32.xlu0 %v1316_v10, %s1076_s21  ;;  %468 = vrot.lane.b32.xlu1 %v1294_v6, %s1076_s21  ;;  %v645_v12 = vadd.f32 %v644_v63, %v643_v54 }
  0x81   : > { %v646_v14 = vrot.slane %v645_v12, 4 }
  0x83   : > { %v647_v17 = vadd.f32 %v646_v14, %v645_v12 }
  0x85   : > { %v648_v22 = vrot.slane %v647_v17, 2 }
  0x87   : > { %v649_v27 = vadd.f32 %v648_v22, %v647_v17 }
  0x89   : > { %v650_v32 = vrot.slane %v649_v27, 1 }
  0x8b   : > { %v651_v37 = vadd.f32 %v650_v32, %v649_v27 }
  0x8d   : > { %v653_v42 = vsub.f32 %v651_v37, %v642_v62 }
  0x8f   : > { %v656_v44 = vrot.slane %v653_v42, 6 }
  0xc9   : > { %v318_v13 = vpop.permute.xlu0 %317  ;;  %v324_v15 = vpop.permute.xlu1 %323 }
  0xca   : > { %v319_v16 = vsel %vm316_vm10, %v318_v13, %v1274_v0  ;;  %v325_v18 = vsel %vm316_vm10, %v324_v15, %v1277_v1 }
  0xcb   : > { %341 = vrot.lane.b32.xlu0 %v319_v16, %s1075_s15 }
  0xcd   : > { %v321_v19 = vpop.permute.xlu0 %320  ;;  %v327_v20 = vpop.permute.xlu1 %326 }
  0xce   : > { %v322_v21 = vsel %vm316_vm10, %v321_v19, %v1280_v2  ;;  %v328_v23 = vsel %vm316_vm10, %v327_v20, %v1287_v3 }
  0xcf   : > { %345 = vrot.lane.b32.xlu0 %v325_v18, %s1075_s15  ;;  %343 = vrot.lane.b32.xlu1 %v322_v21, %s1075_s15 }
  0xd1   : > { %v330_v24 = vpop.permute.xlu0 %329  ;;  %v333_v25 = vpop.permute.xlu1 %332 }
  0xd2   : > { %v331_v26 = vsel %vm316_vm10, %v330_v24, %v1304_v8  ;;  %v334_v28 = vsel %vm316_vm10, %v333_v25, %v1290_v4 }
  0xd3   : > { %347 = vrot.lane.b32.xlu1 %v328_v23, %s1075_s15  ;;  %349 = vrot.lane.b32.xlu0 %v331_v26, %s1075_s15 }
  0xd5   : > { %v435_v29 = vpop.permute.xlu0 %434  ;;  %v438_v30 = vpop.permute.xlu1 %437 }
  0xd6   : > { %v436_v31 = vsel %vm316_vm10, %v435_v29, %v1310_v9  ;;  %v439_v33 = vsel %vm316_vm10, %v438_v30, %v1292_v5 }
  0xd7   : > { %351 = vrot.lane.b32.xlu1 %v334_v28, %s1075_s15  ;;  %446 = vrot.lane.b32.xlu0 %v436_v31, %s1075_s15 }
  0xd9   : > { %v441_v34 = vpop.permute.xlu0 %440  ;;  %v444_v35 = vpop.permute.xlu1 %443 }
  0xda   : > { %v442_v36 = vsel %vm316_vm10, %v441_v34, %v1316_v10  ;;  %v445_v38 = vsel %vm316_vm10, %v444_v35, %v1294_v6 }
  0xdb   : > { %448 = vrot.lane.b32.xlu1 %v439_v33, %s1075_s15  ;;  %450 = vrot.lane.b32.xlu0 %v442_v36, %s1075_s15 }
  0xdd   : > { %v336_v39 = vpop.permute.xlu0 %335  ;;  %v339_v40 = vpop.permute.xlu1 %338 }
  0xde   : > { %v337_v41 = vsel %vm316_vm10, %v336_v39, %v1323_v11  ;;  %v340_v43 = vsel %vm316_vm10, %v339_v40, %v1297_v7 }
  0xdf   : > { %452 = vrot.lane.b32.xlu1 %v445_v38, %s1075_s15  ;;  %353 = vrot.lane.b32.xlu0 %v337_v41, %s1075_s15 }
  0xe1   : > { %v374_v46 = vpop.permute.xlu0 %373  ;;  %v376_v47 = vpop.permute.xlu1 %375 }
  0xe3   : > { %355 = vrot.lane.b32.xlu1 %v340_v43, %s1075_s15  ;;  %385 = vrot.lane.b32.xlu0 %v1323_v11, %s1076_s21 }
  0xe5   : > { %v378_v48 = vpop.permute.xlu0 %377  ;;  %v380_v49 = vpop.permute.xlu1 %379 }
  0xe7   : > { %387 = vrot.lane.b32.xlu1 %v1297_v7, %s1076_s21  ;;  %657 = vrot.lane.b32.xlu0 %v656_v44, %s1076_s21 }
  0xe9   : > { %v382_v50 = vpop.permute.xlu0 %381  ;;  %v384_v51 = vpop.permute.xlu1 %383 }
  0xed   : > { %v463_v52 = vpop.permute.xlu0 %462  ;;  %v465_v53 = vpop.permute.xlu1 %464 }
  0xf1   : > { %v467_v55 = vpop.permute.xlu0 %466  ;;  %v469_v56 = vpop.permute.xlu1 %468 }
 0x13d   : > { %v342_v57 = vpop.permute.xlu0 %341 }
 0x13e   : > { %v357_v12 = vsel %vm316_vm10, %v342_v57, %v1274_v0 }
 0x13f   : > { %v397_v17 = vsub.f32 %v357_v12, %v374_v46 }
 0x141   : > { %v344_v58 = vpop.permute.xlu1 %343  ;;  %v346_v59 = vpop.permute.xlu0 %345  ;;  %v405_v27 = vand.u32 2147483647, %v397_v17 }
 0x142   : > { %v359_v62 = vsel %vm316_vm10, %v346_v59, %v1277_v1  ;;  %v358_v21 = vsel %vm316_vm10, %v344_v58, %v1280_v2 }
 0x143   : > { %v399_v16 = vsub.f32 %v359_v62, %v378_v48  ;;  %v398_v28 = vsub.f32 %v358_v21, %v376_v47  ;;  %v414_v38 = vsel %vm413_vm12, %v405_v27, 0.0 }
 0x145   : > { %v348_v60 = vpop.permute.xlu1 %347  ;;  %v350_v61 = vpop.permute.xlu0 %349  ;;  %v407_v25 = vand.u32 2147483647, %v399_v16  ;;  %v406_v39 = vand.u32 2147483647, %v398_v28 }
 0x146   : > { %v361_v13 = vsel %vm316_vm10, %v350_v61, %v1304_v8  ;;  %v360_v18 = vsel %vm316_vm10, %v348_v60, %v1287_v3 }
 0x147   : > { %v401_v22 = vsub.f32 %v361_v13, %v382_v50  ;;  %v400_v3 = vsub.f32 %v360_v18, %v380_v49  ;;  %v415_v35 = vsel %vm413_vm12, %v407_v25, 0.0 }
 0x149   : > { %v352_v54 = vpop.permute.xlu1 %351  ;;  %v447_v63 = vpop.permute.xlu0 %446  ;;  %v409_v31 = vand.u32 2147483647, %v401_v22  ;;  %v408_v36 = vand.u32 2147483647, %v400_v3 }
 0x14a   : > { %v454_v14 = vsel %vm316_vm10, %v447_v63, %v1310_v9  ;;  %v362_v8 = vsel %vm316_vm10, %v352_v54, %v1290_v4 }
 0x14b   : > { %v474_v15 = vsub.f32 %v454_v14, %v463_v52  ;;  %v417_v42 = vsel %vm413_vm12, %v409_v31, 0.0  ;;  %v422_v46 = vsel %vm413_vm12, %v408_v36, 0.0 }
 0x14d   : > { %v478_v19 = vmul.f32 %v474_v15, %v474_v15  ;;  %v449_v20 = vpop.permute.xlu1 %448  ;;  %v451_v1 = vpop.permute.xlu0 %450 }
 0x14e   : > { %v455_v0 = vsel %vm316_vm10, %v449_v20, %v1292_v5  ;;  %v456_v9 = vsel %vm316_vm10, %v451_v1, %v1316_v10  ;;  %v402_v5 = vsub.f32 %v362_v8, %v384_v51  ;;  %v421_v51 = vsel %vm413_vm12, %v406_v39, 0.0 }
 0x14f   : > { %v475_v23 = vsub.f32 %v455_v0, %v465_v53  ;;  %v476_v24 = vsub.f32 %v456_v9, %v467_v55  ;;  %v1465_v26 = vadd.f32 1e-06, %v478_v19 }
 0x150   : > { %v410_v43 = vand.u32 2147483647, %v402_v5 }
 0x151   : > { %v479_v2 = vmul.f32 %v475_v23, %v475_v23  ;;  %v453_v29 = vpop.permute.xlu1 %452  ;;  %v354_v30 = vpop.permute.xlu0 %353  ;;  %v480_v32 = vmul.f32 %v476_v24, %v476_v24  ;;  %911 = vrsqrt.f32 %v1465_v26  ;;  %vm488_vm14 = vcmp.eq.f32.partialorder %v1465_v26, inf }
 0x152   : > { %v457_v10 = vsel %vm316_vm10, %v453_v29, %v1294_v6  ;;  %v363_v34 = vsel %vm316_vm10, %v354_v30, %v1323_v11  ;;  %v416_v11 = vadd.f32 %v415_v35, %v414_v38  ;;  %v424_v52 = vsel %vm413_vm12, %v410_v43, 0.0  ;;  %v654_v43 = vld [vmem:[%s1443_s26] sm:$0x3] }
 0x153   : > { %v1469_v33 = vadd.f32 1e-06, %v479_v2  ;;  %v477_v4 = vsub.f32 %v457_v10, %v469_v56  ;;  %v484_v37 = vadd.f32 1e-06, %v480_v32  ;;  %v423_v56 = vadd.f32 %v422_v46, %v421_v51 }
 0x154   : > { %v418_v48 = vadd.f32 %v417_v42, %v416_v11  ;;  %v491_v20 = vand.u32 2147483648, %v1465_v26  ;;  %vm490_vm2 = vcmp.eq.f32.partialorder %v1465_v26, 0.0 }
 0x155   : > { %913 = vrsqrt.f32 %v1469_v33  ;;  %v481_v40 = vmul.f32 %v477_v4, %v477_v4  ;;  %v356_v41 = vpop.permute.xlu1 %355  ;;  %v386_v6 = vpop.permute.xlu0 %385  ;;  %v425_v60 = vadd.f32 %v424_v52, %v423_v56  ;;  %vm502_vm13 = vcmp.eq.f32.partialorder %v484_v37, inf }
 0x156   : > { %915 = vrsqrt.f32 %v484_v37  ;;  %v403_v44 = vsub.f32 %v363_v34, %v386_v6  ;;  %v364_v49 = vsel %vm316_vm10, %v356_v41, %v1297_v7  ;;  %v505_v1 = vand.u32 2147483648, %v484_v37 }
 0x157   : > { %v485_v45 = vadd.f32 1e-06, %v481_v40  ;;  %vm504_vm0 = vcmp.eq.f32.partialorder %v484_v37, 0.0  ;;  %vm495_vm1 = vcmp.eq.f32.partialorder %v1469_v33, inf  ;;  %v498_v24 = vand.u32 2147483648, %v1469_v33 }
 0x158   : > { %v411_v47 = vand.u32 2147483647, %v403_v44  ;;  %vm497_vm4 = vcmp.eq.f32.partialorder %v1469_v33, 0.0 }
 0x159   : > { %917 = vrsqrt.f32 %v485_v45  ;;  %v388_v50 = vpop.permute.xlu1 %387  ;;  %vm509_vm15 = vcmp.eq.f32.partialorder %v485_v45, inf  ;;  %v512_v0 = vand.u32 2147483648, %v485_v45  ;;  %vm511_vm3 = vcmp.eq.f32.partialorder %v485_v45, 0.0  ;;  %v658_v41 = vpop.permute.xlu0 %657 }
 0x15a   : > { %v419_v53 = vsel %vm413_vm12, %v411_v47, 0.0  ;;  %v404_v55 = vsub.f32 %v364_v49, %v388_v50 }
 0x15b   : > { %v420_v57 = vadd.f32 %v419_v53, %v418_v48  ;;  %v912_v61 = vpop.eup %911 }
 0x15c   : > { %v412_v58 = vand.u32 2147483647, %v404_v55  ;;  %v487_v14 = vmul.f32 %v912_v61, %v1465_v26 }
 0x15d   : > { %v428_v59 = vmul.f32 -37.5, %v420_v57 }
 0x15e   : > { %v426_v62 = vsel %vm413_vm12, %v412_v58, 0.0  ;;  %v489_v22 = vsel %vm488_vm14, %v1465_v26, %v487_v14 }
 0x15f   : > { %v914_v54 = vpop.eup %913  ;;  %v430_v63 = vmul.f32 1.442695, %v428_v59  ;;  %v427_v12 = vadd.f32 %v426_v62, %v425_v60  ;;  %v492_v25 = vsel %vm490_vm2, %v491_v20, %v489_v22 }
 0x160   : > { %v916_v7 = vpop.eup %915  ;;  %v494_v17 = vmul.f32 %v914_v54, %v1469_v33  ;;  %v514_v29 = vsel %vm413_vm12, %v492_v25, 0.0 }
 0x161   : > { %v501_v13 = vmul.f32 %v916_v7, %v484_v37  ;;  %919 = vpow2.f32 %v430_v63  ;;  %v429_v15 = vmul.f32 -37.5, %v427_v12 }
 0x162   : > { %v496_v23 = vsel %vm495_vm1, %v1469_v33, %v494_v17 }
 0x163   : > { %v918_v16 = vpop.eup %917  ;;  %v432_v18 = vmul.f32 1.442695, %v429_v15  ;;  %v503_v19 = vsel %vm502_vm13, %v484_v37, %v501_v13  ;;  %v499_v28 = vsel %vm497_vm4, %v498_v24, %v496_v23 }
 0x164   : > { %v508_v21 = vmul.f32 %v918_v16, %v485_v45  ;;  %v506_v9 = vsel %vm504_vm0, %v505_v1, %v503_v19  ;;  %v517_v26 = vsel %vm413_vm12, %v499_v28, 0.0 }
 0x165   : > { %921 = vpow2.f32 %v432_v18  ;;  %v515_v27 = vsel %vm413_vm12, %v506_v9, 0.0 }
 0x166   : > { %v510_v8 = vsel %vm509_vm15, %v485_v45, %v508_v21  ;;  %v516_v31 = vadd.f32 %v515_v27, %v514_v29 }
 0x167   : > { %v513_v3 = vsel %vm511_vm3, %v512_v0, %v510_v8 }
 0x168   : > { %v518_v30 = vsel %vm413_vm12, %v513_v3, 0.0 }
 0x169   : > { %v519_v5 = vadd.f32 %v518_v30, %v517_v26 }
 0x16b   : > { %v920_v2 = vpop.eup %919 }
 0x16c   : > { %v520_v32 = vmul.f32 %v920_v2, %v516_v31 }
 0x16e   : > { %v522_v34 = vsel %vm413_vm12, %v520_v32, 0.0 }
 0x16f   : > { %v922_v10 = vpop.eup %921 }
 0x170   : > { %v521_v4 = vmul.f32 %v922_v10, %v519_v5 }
 0x172   : > { %v523_v33 = vsel %vm413_vm12, %v521_v4, 0.0 }
 0x173   : > { %v524_v35 = vadd.f32 %v523_v33, %v522_v34 }
 0x175   : > { %v525_v36 = vrot.slane %v524_v35, 4 }
 0x177   : > { %v526_v37 = vadd.f32 %v525_v36, %v524_v35 }
 0x179   : > { %v527_v38 = vrot.slane %v526_v37, 2 }
 0x17b   : > { %v528_v39 = vadd.f32 %v527_v38, %v526_v37 }
 0x17d   : > { %v529_v40 = vrot.slane %v528_v39, 1 }
 0x17f   : > { %v530_v6 = vadd.f32 %v529_v40, %v528_v39 }
 0x181   : > { %v661_v42 = vsel %vm660_vm5, %v530_v6, %v658_v41 }
 0x182   : > { %663 = vrot.lane.b32.xlu1 %v661_v42, %s1078_s30 }
 0x1f4   : > { %v664_v44 = vpop.permute.xlu1 %663 }
 0x1f5   : > { %v666_v11 = vadd.f32 %v664_v44, %v654_v43 }
 0x1f7   : > { %668 = vst.msk [vmem:[%s1443_s26] sm:$0x3] %vm257_vm11, %v666_v11 }
 0x1f8   : > { %996 = shalt.err (!%p993_p11)
}
 0x1f9   : > { %s997_s4 = scalar_lea.hbm %s1507_s20, 32  ;;  %s1001_s3 = scalar_lea.hbm %s1560_s2, 64 }
 0x1fa   : > { %p998_p1 = scmp.ne.s32.totalorder %s1507_s20, %s997_s4  ;;  %p1002_p5 = scmp.lt.u32.totalorder %s1507_s20, %s1560_s2 }
 0x1fb   : > { %p1003_p4 = scmp.lt.u32.totalorder %s1001_s3, %s997_s4  ;;  %p1005_p0 = scmp.lt.u32.totalorder %s997_s4, %s1507_s20 }
 0x1fc   : > { %p999_p6 = pnand %p998_p1, %p1571_p3 }
 0x1fd   : > { %p1004_p8 = por %p1003_p4, %p1002_p5 }
 0x1fe   : > { %p1000_p2 = pneg %p999_p6 }
 0x1ff   : > { %p1006_p12 = por %p1005_p0, %p1004_p8 }
 0x201   : > { %p1007_p13 = pnand %p1006_p12, %p1000_p2 }
 0x203   : > { %1010 = shalt.err (!%p1007_p13)
}
 0x204   : > { %830 = dma.vmem_to_hbm [thread:$0]  (%p1571_p3), %s1509_s16, 32, %s1507_s20, %s677_s6  }
 0x205 PF: > { %s704_s19 = sand.u32 1, %s1049_s9   ;;  %p1572_p7 = scmp.ne.s32.totalorder %s1566_s24, 0 }
 0x206   : > { %p1573_p10 = scmp.ge.s32.totalorder %s1069_s14, 2  ;;  %s705_s26 = scalar_lea.sflag [#allocation6], %s704_s19 }
 0x208   : > { %p840_p9 = pnand %p1573_p10, %p1572_p7 }
 0x20a   : > { %1044 = dma.done.wait (!%p840_p9), %s705_s26, 32  }
 0x20b   : > { %1046 = vsyncadd (!%p840_p9), %s705_s26, 4294967264  ;;  %s21_s14 = sadd.s32 1, %s1069_s14   ;;  %s1574_s9 = smov %s1053_s10 }
 0x20c   : > { %p18_p11 = scmp.ge.s32.totalorder %s21_s14, 4   ;;  %s1575_s10 = smov %s1057_s11 }
 0x20d   : > { %s1576_s11 = smov %s1151_s23  ;;  %s1577_s12 = smov %s1065_s13 }
 0x20e   : > { %s1578_s13 = smov %s1580_s17  ;;  %20 = sbr.rel (!%p18_p11) target bundleno = 8 (0x8), region = 94 }
 0x215   :  { %710 = vsyncpa [#allocation5], 1 }
 0x216   :  { %712 = vsyncpa [#allocation5 + $0x1], 1 }
 0x217   :  { %713 = vsyncpa [#allocation8], 1 }
 0x218   :  { %715 = vsyncpa [#allocation8 + $0x1], 1 }
 0x219   :  { %716 = vsyncpa [#allocation6], 1 }
 0x21a   :  { %718 = vsyncpa [#allocation6 + $0x1], 1 }

</bundles_post_ra>
